<compile_context>
chip_gen: v6e
topology: v6e:2x2x1
jax: 0.10.0
libtpu: 0.0.40
codegen_flags: <defaults>
</compile_context>

<pallas_src>
import functools

import jax
import jax.numpy as jnp
from jax.experimental import pallas as pl
from jax.experimental.pallas import tpu as pltpu


def _round_up(x, m):
    return (x + m - 1) // m * m


# ---------------------------------------------------------------------------
# Fused Pallas kernel: gather + mean-pool + DNN (Linear/tanh x2) + L2 normalize
# ---------------------------------------------------------------------------

def _user_model_kernel(x_ref, ut_ref, gt_ref, it_ref, w1_ref, b1_ref, w2_ref,
                       b2_ref, o_ref, *, maxlen, dense_dim, emb_dim):
    f32 = jnp.float32
    x = x_ref[...]                                        # [TB, F] float32
    tb = x.shape[0]
    n_user = ut_ref.shape[0]
    n_gender = gt_ref.shape[0]
    n_item = it_ref.shape[0]

    # ---- feature columns (same layout as build_input_feature_position) ----
    uid = x[:, 0:1].astype(jnp.int32)                     # [TB, 1]
    gid = x[:, 1:2].astype(jnp.int32)                     # [TB, 1]
    hist = x[:, 2:2 + maxlen].astype(jnp.int32)           # [TB, L]
    age = x[:, 2 + maxlen:2 + maxlen + dense_dim]         # [TB, dense_dim]

    # ---- SparseFeat embedding lookup: one-hot + MXU matmul -----------------
    # TODO(synk): for vocabularies too large to keep whole in VMEM, switch to a
    # scalar-prefetch / DMA gather instead of the one-hot matmul.
    def gather(ids_col, table_ref, vocab):
        iota = jax.lax.broadcasted_iota(jnp.int32, (tb, vocab), 1)
        onehot = (iota == ids_col).astype(f32)            # [TB, vocab]
        return jnp.dot(onehot, table_ref[...], preferred_element_type=f32)

    user_emb = gather(uid, ut_ref, n_user)                # [TB, E]
    gender_emb = gather(gid, gt_ref, n_gender)            # [TB, E]

    # ---- SequencePoolingLayer(mode='mean', support_masking=True) ----------
    # bag[b, v] = #occurrences of id v in row b (padding id 0 masked out),
    # then pooled_sum = bag @ item_table on the MXU.
    mask = (hist != 0).astype(f32)                        # [TB, L]
    length = jnp.sum(mask, axis=1, keepdims=True)         # [TB, 1]
    iota_v = jax.lax.broadcasted_iota(jnp.int32, (tb, n_item), 1)
    bag = jnp.zeros((tb, n_item), f32)
    for l in range(maxlen):                               # tiny static unroll
        bag = bag + mask[:, l:l + 1] * (iota_v == hist[:, l:l + 1]).astype(f32)
    pooled = (jnp.dot(bag, it_ref[...], preferred_element_type=f32)
              / (length + 1e-8))                          # [TB, E]

    # ---- DNN layer 1: split matmul over feature row-groups (no concat) ----
    w1 = w1_ref[...]                                      # [D_in, H1]
    r1, r2, r3 = emb_dim, 2 * emb_dim, 3 * emb_dim
    acc = b1_ref[...]                                     # [1, H1] broadcasts
    acc = acc + jnp.dot(user_emb, w1[0:r1, :], preferred_element_type=f32)
    acc = acc + jnp.dot(gender_emb, w1[r1:r2, :], preferred_element_type=f32)
    acc = acc + jnp.dot(pooled, w1[r2:r3, :], preferred_element_type=f32)
    acc = acc + jnp.dot(age, w1[r3:r3 + dense_dim, :], preferred_element_type=f32)
    h = jnp.tanh(acc)                                     # [TB, H1]

    # ---- DNN layer 2 -------------------------------------------------------
    h = jnp.tanh(jnp.dot(h, w2_ref[...], preferred_element_type=f32)
                 + b2_ref[...])                           # [TB, H2]

    # ---- F.normalize(p=2, dim=1), eps=1e-12, via rsqrt + mul ---------------
    sumsq = jnp.sum(h * h, axis=1, keepdims=True)
    inv = jax.lax.rsqrt(jnp.maximum(sumsq, 1e-24))
    o_ref[...] = h * inv


# ---------------------------------------------------------------------------
# pallas_call wrapper
# ---------------------------------------------------------------------------

@functools.partial(jax.jit,
                   static_argnames=("maxlen", "dense_dim", "emb_dim", "tile_b"))
def _fused_forward(inputs, user_tbl, gender_tbl, item_tbl, w1, b1, w2, b2,
                   *, maxlen, dense_dim, emb_dim, tile_b):
    bp, f = inputs.shape
    h2 = w2.shape[1]
    grid = (bp // tile_b,)

    def pinned(shape):
        return pl.BlockSpec(shape, lambda i: (0, 0))

    kernel = functools.partial(_user_model_kernel, maxlen=maxlen,
                               dense_dim=dense_dim, emb_dim=emb_dim)
    return pl.pallas_call(
        kernel,
        out_shape=jax.ShapeDtypeStruct((bp, h2), jnp.float32),
        grid_spec=pltpu.PrefetchScalarGridSpec(
            num_scalar_prefetch=0,
            grid=grid,
            in_specs=[
                pl.BlockSpec((tile_b, f), lambda i: (i, 0)),  # flat feature rows
                pinned(user_tbl.shape),
                pinned(gender_tbl.shape),
                pinned(item_tbl.shape),
                pinned(w1.shape),
                pinned(b1.shape),
                pinned(w2.shape),
                pinned(b2.shape),
            ],
            out_specs=pl.BlockSpec((tile_b, h2), lambda i: (i, 0)),
        ),
        compiler_params=pltpu.CompilerParams(
            dimension_semantics=("parallel",)),
    )(inputs, user_tbl, gender_tbl, item_tbl, w1, b1, w2, b2)


def user_model_forward(inputs, params, *, maxlen, dense_dim):
    """UserModel.forward: flat [B, F] float feature rows -> [B, H2] L2-normalized."""
    emb_dim = params["emb"]["user_id"].shape[1]
    b = inputs.shape[0]
    # Batch tile: multiple of 8 sublanes; capped so per-step buffers stay well
    # inside VMEM even on v7x (64 MiB) when B scales up.
    tile_b = min(512, _round_up(b, 8))
    bp = _round_up(b, tile_b)
    if bp != b:
        inputs = jnp.pad(inputs, ((0, bp - b), (0, 0)))
    out = _fused_forward(
        inputs,
        params["emb"]["user_id"], params["emb"]["gender"], params["emb"]["hist_item"],
        params["w1"], params["b1"], params["w2"], params["b2"],
        maxlen=maxlen, dense_dim=dense_dim, emb_dim=emb_dim, tile_b=tile_b)
    return out[:b]


# ---------------------------------------------------------------------------
# Pure-JAX reference (mirrors the PyTorch module semantics)
# ---------------------------------------------------------------------------

def reference_forward(inputs, params, *, maxlen, dense_dim):
    hp = jax.lax.Precision.HIGHEST
    uid = inputs[:, 0].astype(jnp.int32)
    gid = inputs[:, 1].astype(jnp.int32)
    hist = inputs[:, 2:2 + maxlen].astype(jnp.int32)
    age = inputs[:, 2 + maxlen:2 + maxlen + dense_dim]
    u = params["emb"]["user_id"][uid]
    g = params["emb"]["gender"][gid]
    seq = params["emb"]["hist_item"][hist]                    # [B, L, E]
    mask = (hist != 0).astype(jnp.float32)
    length = jnp.sum(mask, axis=1, keepdims=True)
    pooled = jnp.sum(seq * mask[:, :, None], axis=1) / (length + 1e-8)
    x = jnp.concatenate([u, g, pooled, age], axis=-1)
    h = jnp.tanh(jnp.dot(x, params["w1"], precision=hp) + params["b1"])
    h = jnp.tanh(jnp.dot(h, params["w2"], precision=hp) + params["b2"])
    n = jnp.sqrt(jnp.sum(h * h, axis=1, keepdims=True))
    return h / jnp.maximum(n, 1e-12)


# ---------------------------------------------------------------------------
# Deterministic parameters / inputs
# ---------------------------------------------------------------------------

def xavier_normal(key, shape):
    fan_in, fan_out = shape
    std = (2.0 / (fan_in + fan_out)) ** 0.5
    return std * jax.random.normal(key, shape, dtype=jnp.float32)


if __name__ == "__main__":
    # Feature config:
    #   SparseFeat    user_id   (vocab 50,  emb 8)
    #   SparseFeat    gender    (vocab 3,   emb 8)
    #   SeqSparseFeat hist_item (vocab 100, emb 8, maxlen 8, combiner='mean')
    #   DenseFeat     age       (dimension 4)
    B = 8
    EMB = 8
    MAXLEN = 8
    DENSE_DIM = 4
    HIDDEN = [32, 16]
    F_TOTAL = 2 + MAXLEN + DENSE_DIM            # 14
    INPUTS_DIM = 3 * EMB + DENSE_DIM            # 28

    key = jax.random.PRNGKey(0)
    keys = jax.random.split(key, 12)

    params = {
        "emb": {
            "user_id": 1e-4 * jax.random.normal(keys[0], (50, EMB), jnp.float32),
            "gender": 1e-4 * jax.random.normal(keys[1], (3, EMB), jnp.float32),
            "hist_item": 1e-4 * jax.random.normal(keys[2], (100, EMB), jnp.float32),
        },
        "w1": xavier_normal(keys[3], (INPUTS_DIM, HIDDEN[0])),
        "b1": 0.01 * jax.random.uniform(keys[4], (1, HIDDEN[0]), jnp.float32,
                                        minval=-1.0, maxval=1.0),
        "w2": xavier_normal(keys[5], (HIDDEN[0], HIDDEN[1])),
        "b2": 0.01 * jax.random.uniform(keys[6], (1, HIDDEN[1]), jnp.float32,
                                        minval=-1.0, maxval=1.0),
    }

    # Deterministic [B, F] float feature row-matrix (same column layout as the
    # PyTorch model's build_input_feature_position).
    user_ids = jax.random.randint(keys[7], (B, 1), 1, 50)
    genders = jax.random.randint(keys[8], (B, 1), 1, 3)
    hist_ids = jax.random.randint(keys[9], (B, MAXLEN), 1, 100)
    lengths = 1 + (jnp.arange(B) % MAXLEN)                      # variable lengths
    valid = jnp.arange(MAXLEN)[None, :] < lengths[:, None]
    hist_ids = jnp.where(valid, hist_ids, 0)                    # 0 == padding id
    age = jax.random.uniform(keys[10], (B, DENSE_DIM), jnp.float32)

    inputs = jnp.concatenate(
        [user_ids.astype(jnp.float32),
         genders.astype(jnp.float32),
         hist_ids.astype(jnp.float32),
         age],
        axis=-1,
    )
    assert inputs.shape == (B, F_TOTAL)

    out = user_model_forward(inputs, params, maxlen=MAXLEN, dense_dim=DENSE_DIM)
    out = jax.block_until_ready(out)

    assert out.shape == (B, HIDDEN[-1])
    # rows are L2-normalized
    row_norms = jnp.sqrt(jnp.sum(out * out, axis=1))
    assert bool(jnp.all(jnp.abs(row_norms - 1.0) < 1e-4))

    # cross-check against the pure-JAX reference (loose tol to allow for TPU
    # matmul-precision differences between XLA and Mosaic lowering)
    ref = reference_forward(inputs, params, maxlen=MAXLEN, dense_dim=DENSE_DIM)
    assert bool(jnp.all(jnp.abs(out - ref) < 1e-2))

    print("KERNEL_OK")
</pallas_src>

<mosaic_0001>
module attributes {stable_mosaic.version = 11 : i64} {
  func.func @_user_model_kernel(%arg0: i32, %arg1: memref<8x14xf32, #tpu.memory_space<vmem>>, %arg2: memref<50x8xf32, #tpu.memory_space<vmem>>, %arg3: memref<3x8xf32, #tpu.memory_space<vmem>>, %arg4: memref<100x8xf32, #tpu.memory_space<vmem>>, %arg5: memref<28x32xf32, #tpu.memory_space<vmem>>, %arg6: memref<1x32xf32, #tpu.memory_space<vmem>>, %arg7: memref<32x16xf32, #tpu.memory_space<vmem>>, %arg8: memref<1x16xf32, #tpu.memory_space<vmem>>, %arg9: memref<8x16xf32, #tpu.memory_space<vmem>>) attributes {dimension_semantics = [#tpu.dimension_semantics<parallel>], iteration_bounds = array<i64: 1>, scalar_prefetch = 0 : i64, scratch_operands = 0 : i64, tpu.core_type = #tpu.core_type<tc>, window_params = [{transform_indices = @transform_0, window_bounds = array<i64: 8, 14>}, {pipeline_mode = #tpu.pipeline_mode<synchronous>, transform_indices = @transform_1, window_bounds = array<i64: 50, 8>}, {pipeline_mode = #tpu.pipeline_mode<synchronous>, transform_indices = @transform_2, window_bounds = array<i64: 3, 8>}, {pipeline_mode = #tpu.pipeline_mode<synchronous>, transform_indices = @transform_3, window_bounds = array<i64: 100, 8>}, {pipeline_mode = #tpu.pipeline_mode<synchronous>, transform_indices = @transform_4, window_bounds = array<i64: 28, 32>}, {pipeline_mode = #tpu.pipeline_mode<synchronous>, transform_indices = @transform_5, window_bounds = array<i64: 1, 32>}, {pipeline_mode = #tpu.pipeline_mode<synchronous>, transform_indices = @transform_6, window_bounds = array<i64: 32, 16>}, {pipeline_mode = #tpu.pipeline_mode<synchronous>, transform_indices = @transform_7, window_bounds = array<i64: 1, 16>}, {transform_indices = @transform_8, window_bounds = array<i64: 8, 16>}]} {
    %c0 = arith.constant 0 : index
    %c0_0 = arith.constant 0 : index
    %0 = vector.load %arg1[%c0, %c0_0] : memref<8x14xf32, #tpu.memory_space<vmem>>, vector<8x14xf32>
    %1 = vector.extract_strided_slice %0 {offsets = [0, 0], sizes = [8, 1], strides = [1, 1]} : vector<8x14xf32> to vector<8x1xf32>
    %2 = arith.fptosi %1 : vector<8x1xf32> to vector<8x1xi32>
    %3 = vector.extract_strided_slice %0 {offsets = [0, 1], sizes = [8, 1], strides = [1, 1]} : vector<8x14xf32> to vector<8x1xf32>
    %4 = arith.fptosi %3 : vector<8x1xf32> to vector<8x1xi32>
    %5 = vector.extract_strided_slice %0 {offsets = [0, 2], sizes = [8, 8], strides = [1, 1]} : vector<8x14xf32> to vector<8x8xf32>
    %6 = arith.fptosi %5 : vector<8x8xf32> to vector<8x8xi32>
    %7 = vector.extract_strided_slice %0 {offsets = [0, 10], sizes = [8, 4], strides = [1, 1]} : vector<8x14xf32> to vector<8x4xf32>
    %8 = tpu.iota {dimensions = array<i32: 1>} : vector<8x50xi32>
    %9 = vector.broadcast %2 : vector<8x1xi32> to vector<8x50xi32>
    %10 = arith.cmpi eq, %8, %9 : vector<8x50xi32>
    %11 = arith.extui %10 : vector<8x50xi1> to vector<8x50xi32>
    %12 = arith.sitofp %11 : vector<8x50xi32> to vector<8x50xf32>
    %c0_1 = arith.constant 0 : index
    %c0_2 = arith.constant 0 : index
    %13 = vector.load %arg2[%c0_1, %c0_2] : memref<50x8xf32, #tpu.memory_space<vmem>>, vector<50x8xf32>
    %cst = arith.constant dense<0.000000e+00> : vector<8x8xf32>
    %14 = tpu.matmul %12, %13, %cst {dimension_numbers = #tpu.dot_dimension_numbers<[1], [0], [0], [1], [0, 0, 1, 1], [], []>} : vector<8x50xf32>, vector<50x8xf32>, vector<8x8xf32> -> vector<8x8xf32>
    %15 = tpu.iota {dimensions = array<i32: 1>} : vector<8x3xi32>
    %16 = vector.broadcast %4 : vector<8x1xi32> to vector<8x3xi32>
    %17 = arith.cmpi eq, %15, %16 : vector<8x3xi32>
    %18 = arith.extui %17 : vector<8x3xi1> to vector<8x3xi32>
    %19 = arith.sitofp %18 : vector<8x3xi32> to vector<8x3xf32>
    %c0_3 = arith.constant 0 : index
    %c0_4 = arith.constant 0 : index
    %20 = vector.load %arg3[%c0_3, %c0_4] : memref<3x8xf32, #tpu.memory_space<vmem>>, vector<3x8xf32>
    %cst_5 = arith.constant dense<0.000000e+00> : vector<8x8xf32>
    %21 = tpu.matmul %19, %20, %cst_5 {dimension_numbers = #tpu.dot_dimension_numbers<[1], [0], [0], [1], [0, 0, 1, 1], [], []>} : vector<8x3xf32>, vector<3x8xf32>, vector<8x8xf32> -> vector<8x8xf32>
    %c0_i32 = arith.constant 0 : i32
    %22 = vector.broadcast %c0_i32 : i32 to vector<8x8xi32>
    %23 = arith.cmpi ne, %6, %22 : vector<8x8xi32>
    %24 = arith.extui %23 : vector<8x8xi1> to vector<8x8xi32>
    %25 = arith.sitofp %24 : vector<8x8xi32> to vector<8x8xf32>
    %cst_6 = arith.constant dense<0.000000e+00> : vector<8xf32>
    %26 = vector.multi_reduction <add>, %25, %cst_6 [1] : vector<8x8xf32> to vector<8xf32>
    %27 = vector.shape_cast %26 : vector<8xf32> to vector<8x1xf32>
    %28 = tpu.iota {dimensions = array<i32: 1>} : vector<8x100xi32>
    %cst_7 = arith.constant 0.000000e+00 : f32
    %29 = vector.broadcast %cst_7 : f32 to vector<8x100xf32>
    %30 = vector.extract_strided_slice %25 {offsets = [0, 0], sizes = [8, 1], strides = [1, 1]} : vector<8x8xf32> to vector<8x1xf32>
    %31 = vector.extract_strided_slice %6 {offsets = [0, 0], sizes = [8, 1], strides = [1, 1]} : vector<8x8xi32> to vector<8x1xi32>
    %32 = vector.broadcast %31 : vector<8x1xi32> to vector<8x100xi32>
    %33 = arith.cmpi eq, %28, %32 : vector<8x100xi32>
    %34 = arith.extui %33 : vector<8x100xi1> to vector<8x100xi32>
    %35 = arith.sitofp %34 : vector<8x100xi32> to vector<8x100xf32>
    %36 = vector.broadcast %30 : vector<8x1xf32> to vector<8x100xf32>
    %37 = arith.mulf %36, %35 : vector<8x100xf32>
    %38 = arith.addf %29, %37 : vector<8x100xf32>
    %39 = vector.extract_strided_slice %25 {offsets = [0, 1], sizes = [8, 1], strides = [1, 1]} : vector<8x8xf32> to vector<8x1xf32>
    %40 = vector.extract_strided_slice %6 {offsets = [0, 1], sizes = [8, 1], strides = [1, 1]} : vector<8x8xi32> to vector<8x1xi32>
    %41 = vector.broadcast %40 : vector<8x1xi32> to vector<8x100xi32>
    %42 = arith.cmpi eq, %28, %41 : vector<8x100xi32>
    %43 = arith.extui %42 : vector<8x100xi1> to vector<8x100xi32>
    %44 = arith.sitofp %43 : vector<8x100xi32> to vector<8x100xf32>
    %45 = vector.broadcast %39 : vector<8x1xf32> to vector<8x100xf32>
    %46 = arith.mulf %45, %44 : vector<8x100xf32>
    %47 = arith.addf %38, %46 : vector<8x100xf32>
    %48 = vector.extract_strided_slice %25 {offsets = [0, 2], sizes = [8, 1], strides = [1, 1]} : vector<8x8xf32> to vector<8x1xf32>
    %49 = vector.extract_strided_slice %6 {offsets = [0, 2], sizes = [8, 1], strides = [1, 1]} : vector<8x8xi32> to vector<8x1xi32>
    %50 = vector.broadcast %49 : vector<8x1xi32> to vector<8x100xi32>
    %51 = arith.cmpi eq, %28, %50 : vector<8x100xi32>
    %52 = arith.extui %51 : vector<8x100xi1> to vector<8x100xi32>
    %53 = arith.sitofp %52 : vector<8x100xi32> to vector<8x100xf32>
    %54 = vector.broadcast %48 : vector<8x1xf32> to vector<8x100xf32>
    %55 = arith.mulf %54, %53 : vector<8x100xf32>
    %56 = arith.addf %47, %55 : vector<8x100xf32>
    %57 = vector.extract_strided_slice %25 {offsets = [0, 3], sizes = [8, 1], strides = [1, 1]} : vector<8x8xf32> to vector<8x1xf32>
    %58 = vector.extract_strided_slice %6 {offsets = [0, 3], sizes = [8, 1], strides = [1, 1]} : vector<8x8xi32> to vector<8x1xi32>
    %59 = vector.broadcast %58 : vector<8x1xi32> to vector<8x100xi32>
    %60 = arith.cmpi eq, %28, %59 : vector<8x100xi32>
    %61 = arith.extui %60 : vector<8x100xi1> to vector<8x100xi32>
    %62 = arith.sitofp %61 : vector<8x100xi32> to vector<8x100xf32>
    %63 = vector.broadcast %57 : vector<8x1xf32> to vector<8x100xf32>
    %64 = arith.mulf %63, %62 : vector<8x100xf32>
    %65 = arith.addf %56, %64 : vector<8x100xf32>
    %66 = vector.extract_strided_slice %25 {offsets = [0, 4], sizes = [8, 1], strides = [1, 1]} : vector<8x8xf32> to vector<8x1xf32>
    %67 = vector.extract_strided_slice %6 {offsets = [0, 4], sizes = [8, 1], strides = [1, 1]} : vector<8x8xi32> to vector<8x1xi32>
    %68 = vector.broadcast %67 : vector<8x1xi32> to vector<8x100xi32>
    %69 = arith.cmpi eq, %28, %68 : vector<8x100xi32>
    %70 = arith.extui %69 : vector<8x100xi1> to vector<8x100xi32>
    %71 = arith.sitofp %70 : vector<8x100xi32> to vector<8x100xf32>
    %72 = vector.broadcast %66 : vector<8x1xf32> to vector<8x100xf32>
    %73 = arith.mulf %72, %71 : vector<8x100xf32>
    %74 = arith.addf %65, %73 : vector<8x100xf32>
    %75 = vector.extract_strided_slice %25 {offsets = [0, 5], sizes = [8, 1], strides = [1, 1]} : vector<8x8xf32> to vector<8x1xf32>
    %76 = vector.extract_strided_slice %6 {offsets = [0, 5], sizes = [8, 1], strides = [1, 1]} : vector<8x8xi32> to vector<8x1xi32>
    %77 = vector.broadcast %76 : vector<8x1xi32> to vector<8x100xi32>
    %78 = arith.cmpi eq, %28, %77 : vector<8x100xi32>
    %79 = arith.extui %78 : vector<8x100xi1> to vector<8x100xi32>
    %80 = arith.sitofp %79 : vector<8x100xi32> to vector<8x100xf32>
    %81 = vector.broadcast %75 : vector<8x1xf32> to vector<8x100xf32>
    %82 = arith.mulf %81, %80 : vector<8x100xf32>
    %83 = arith.addf %74, %82 : vector<8x100xf32>
    %84 = vector.extract_strided_slice %25 {offsets = [0, 6], sizes = [8, 1], strides = [1, 1]} : vector<8x8xf32> to vector<8x1xf32>
    %85 = vector.extract_strided_slice %6 {offsets = [0, 6], sizes = [8, 1], strides = [1, 1]} : vector<8x8xi32> to vector<8x1xi32>
    %86 = vector.broadcast %85 : vector<8x1xi32> to vector<8x100xi32>
    %87 = arith.cmpi eq, %28, %86 : vector<8x100xi32>
    %88 = arith.extui %87 : vector<8x100xi1> to vector<8x100xi32>
    %89 = arith.sitofp %88 : vector<8x100xi32> to vector<8x100xf32>
    %90 = vector.broadcast %84 : vector<8x1xf32> to vector<8x100xf32>
    %91 = arith.mulf %90, %89 : vector<8x100xf32>
    %92 = arith.addf %83, %91 : vector<8x100xf32>
    %93 = vector.extract_strided_slice %25 {offsets = [0, 7], sizes = [8, 1], strides = [1, 1]} : vector<8x8xf32> to vector<8x1xf32>
    %94 = vector.extract_strided_slice %6 {offsets = [0, 7], sizes = [8, 1], strides = [1, 1]} : vector<8x8xi32> to vector<8x1xi32>
    %95 = vector.broadcast %94 : vector<8x1xi32> to vector<8x100xi32>
    %96 = arith.cmpi eq, %28, %95 : vector<8x100xi32>
    %97 = arith.extui %96 : vector<8x100xi1> to vector<8x100xi32>
    %98 = arith.sitofp %97 : vector<8x100xi32> to vector<8x100xf32>
    %99 = vector.broadcast %93 : vector<8x1xf32> to vector<8x100xf32>
    %100 = arith.mulf %99, %98 : vector<8x100xf32>
    %101 = arith.addf %92, %100 : vector<8x100xf32>
    %c0_8 = arith.constant 0 : index
    %c0_9 = arith.constant 0 : index
    %102 = vector.load %arg4[%c0_8, %c0_9] : memref<100x8xf32, #tpu.memory_space<vmem>>, vector<100x8xf32>
    %cst_10 = arith.constant dense<0.000000e+00> : vector<8x8xf32>
    %103 = tpu.matmul %101, %102, %cst_10 {dimension_numbers = #tpu.dot_dimension_numbers<[1], [0], [0], [1], [0, 0, 1, 1], [], []>} : vector<8x100xf32>, vector<100x8xf32>, vector<8x8xf32> -> vector<8x8xf32>
    %cst_11 = arith.constant 9.99999993E-9 : f32
    %104 = vector.broadcast %cst_11 : f32 to vector<8x1xf32>
    %105 = arith.addf %27, %104 : vector<8x1xf32>
    %106 = vector.broadcast %105 : vector<8x1xf32> to vector<8x8xf32>
    %107 = arith.divf %103, %106 : vector<8x8xf32>
    %c0_12 = arith.constant 0 : index
    %c0_13 = arith.constant 0 : index
    %108 = vector.load %arg5[%c0_12, %c0_13] : memref<28x32xf32, #tpu.memory_space<vmem>>, vector<28x32xf32>
    %c0_14 = arith.constant 0 : index
    %c0_15 = arith.constant 0 : index
    %109 = vector.load %arg6[%c0_14, %c0_15] : memref<1x32xf32, #tpu.memory_space<vmem>>, vector<1x32xf32>
    %110 = vector.extract_strided_slice %108 {offsets = [0, 0], sizes = [8, 32], strides = [1, 1]} : vector<28x32xf32> to vector<8x32xf32>
    %cst_16 = arith.constant dense<0.000000e+00> : vector<8x32xf32>
    %111 = tpu.matmul %14, %110, %cst_16 {dimension_numbers = #tpu.dot_dimension_numbers<[1], [0], [0], [1], [0, 0, 1, 1], [], []>} : vector<8x8xf32>, vector<8x32xf32>, vector<8x32xf32> -> vector<8x32xf32>
    %112 = vector.broadcast %109 : vector<1x32xf32> to vector<8x32xf32>
    %113 = arith.addf %112, %111 : vector<8x32xf32>
    %114 = vector.extract_strided_slice %108 {offsets = [8, 0], sizes = [8, 32], strides = [1, 1]} : vector<28x32xf32> to vector<8x32xf32>
    %cst_17 = arith.constant dense<0.000000e+00> : vector<8x32xf32>
    %115 = tpu.matmul %21, %114, %cst_17 {dimension_numbers = #tpu.dot_dimension_numbers<[1], [0], [0], [1], [0, 0, 1, 1], [], []>} : vector<8x8xf32>, vector<8x32xf32>, vector<8x32xf32> -> vector<8x32xf32>
    %116 = arith.addf %113, %115 : vector<8x32xf32>
    %117 = vector.extract_strided_slice %108 {offsets = [16, 0], sizes = [8, 32], strides = [1, 1]} : vector<28x32xf32> to vector<8x32xf32>
    %cst_18 = arith.constant dense<0.000000e+00> : vector<8x32xf32>
    %118 = tpu.matmul %107, %117, %cst_18 {dimension_numbers = #tpu.dot_dimension_numbers<[1], [0], [0], [1], [0, 0, 1, 1], [], []>} : vector<8x8xf32>, vector<8x32xf32>, vector<8x32xf32> -> vector<8x32xf32>
    %119 = arith.addf %116, %118 : vector<8x32xf32>
    %120 = vector.extract_strided_slice %108 {offsets = [24, 0], sizes = [4, 32], strides = [1, 1]} : vector<28x32xf32> to vector<4x32xf32>
    %cst_19 = arith.constant dense<0.000000e+00> : vector<8x32xf32>
    %121 = tpu.matmul %7, %120, %cst_19 {dimension_numbers = #tpu.dot_dimension_numbers<[1], [0], [0], [1], [0, 0, 1, 1], [], []>} : vector<8x4xf32>, vector<4x32xf32>, vector<8x32xf32> -> vector<8x32xf32>
    %122 = arith.addf %119, %121 : vector<8x32xf32>
    %123 = math.tanh %122 : vector<8x32xf32>
    %c0_20 = arith.constant 0 : index
    %c0_21 = arith.constant 0 : index
    %124 = vector.load %arg7[%c0_20, %c0_21] : memref<32x16xf32, #tpu.memory_space<vmem>>, vector<32x16xf32>
    %cst_22 = arith.constant dense<0.000000e+00> : vector<8x16xf32>
    %125 = tpu.matmul %123, %124, %cst_22 {dimension_numbers = #tpu.dot_dimension_numbers<[1], [0], [0], [1], [0, 0, 1, 1], [], []>} : vector<8x32xf32>, vector<32x16xf32>, vector<8x16xf32> -> vector<8x16xf32>
    %c0_23 = arith.constant 0 : index
    %c0_24 = arith.constant 0 : index
    %126 = vector.load %arg8[%c0_23, %c0_24] : memref<1x16xf32, #tpu.memory_space<vmem>>, vector<1x16xf32>
    %127 = vector.broadcast %126 : vector<1x16xf32> to vector<8x16xf32>
    %128 = arith.addf %125, %127 : vector<8x16xf32>
    %129 = math.tanh %128 : vector<8x16xf32>
    %130 = arith.mulf %129, %129 : vector<8x16xf32>
    %cst_25 = arith.constant dense<0.000000e+00> : vector<8xf32>
    %131 = vector.multi_reduction <add>, %130, %cst_25 [1] : vector<8x16xf32> to vector<8xf32>
    %132 = vector.shape_cast %131 : vector<8xf32> to vector<8x1xf32>
    %cst_26 = arith.constant 1.000000e-24 : f32
    %133 = vector.broadcast %cst_26 : f32 to vector<8x1xf32>
    %134 = arith.maximumf %132, %133 : vector<8x1xf32>
    %135 = math.rsqrt %134 : vector<8x1xf32>
    %136 = vector.broadcast %135 : vector<8x1xf32> to vector<8x16xf32>
    %137 = arith.mulf %129, %136 : vector<8x16xf32>
    %c0_27 = arith.constant 0 : index
    %c0_28 = arith.constant 0 : index
    %138 = vector.load %arg9[%c0_27, %c0_28] : memref<8x16xf32, #tpu.memory_space<vmem>>, vector<8x16xf32>
    tpu.vector_store %arg9[%c0_27, %c0_28], %137 {strides = array<i32>} : memref<8x16xf32, #tpu.memory_space<vmem>>, vector<8x16xf32>,
    return
  }
  func.func @transform_0(%arg0: i32) -> (i32, i32) {
    %c0_i32 = arith.constant 0 : i32
    %c0_i32_0 = arith.constant 0 : i32
    return %arg0, %c0_i32 : i32, i32
  }
  func.func @transform_1(%arg0: i32) -> (i32, i32) {
    %c0_i32 = arith.constant 0 : i32
    %c0_i32_0 = arith.constant 0 : i32
    %c0_i32_1 = arith.constant 0 : i32
    return %c0_i32, %c0_i32_0 : i32, i32
  }
  func.func @transform_2(%arg0: i32) -> (i32, i32) {
    %c0_i32 = arith.constant 0 : i32
    %c0_i32_0 = arith.constant 0 : i32
    %c0_i32_1 = arith.constant 0 : i32
    return %c0_i32, %c0_i32_0 : i32, i32
  }
  func.func @transform_3(%arg0: i32) -> (i32, i32) {
    %c0_i32 = arith.constant 0 : i32
    %c0_i32_0 = arith.constant 0 : i32
    %c0_i32_1 = arith.constant 0 : i32
    return %c0_i32, %c0_i32_0 : i32, i32
  }
  func.func @transform_4(%arg0: i32) -> (i32, i32) {
    %c0_i32 = arith.constant 0 : i32
    %c0_i32_0 = arith.constant 0 : i32
    %c0_i32_1 = arith.constant 0 : i32
    return %c0_i32, %c0_i32_0 : i32, i32
  }
  func.func @transform_5(%arg0: i32) -> (i32, i32) {
    %c0_i32 = arith.constant 0 : i32
    %c0_i32_0 = arith.constant 0 : i32
    %c0_i32_1 = arith.constant 0 : i32
    return %c0_i32, %c0_i32_0 : i32, i32
  }
  func.func @transform_6(%arg0: i32) -> (i32, i32) {
    %c0_i32 = arith.constant 0 : i32
    %c0_i32_0 = arith.constant 0 : i32
    %c0_i32_1 = arith.constant 0 : i32
    return %c0_i32, %c0_i32_0 : i32, i32
  }
  func.func @transform_7(%arg0: i32) -> (i32, i32) {
    %c0_i32 = arith.constant 0 : i32
    %c0_i32_0 = arith.constant 0 : i32
    %c0_i32_1 = arith.constant 0 : i32
    return %c0_i32, %c0_i32_0 : i32, i32
  }
  func.func @transform_8(%arg0: i32) -> (i32, i32) {
    %c0_i32 = arith.constant 0 : i32
    %c0_i32_0 = arith.constant 0 : i32
    return %arg0, %c0_i32 : i32, i32
  }
}

</mosaic_0001>

<bundles_post_ra>
// kernel: _fused_forward.1
= control target key start
LH: loop header
LB: loop body
LE: loop exit
PB: predicated region body
PF: predicated region fallthrough
CT: control target
= control target key end

     0   :  { %v1041_v1 = vmov 2   ;;  %s1290_s0 = inlined_call_operand.vmem [shape: f32[8,14], index: 0, kind: input, shape index: {}]   ;;  %s1291_s1 = inlined_call_operand.vmem [shape: f32[50,8], index: 1, kind: input, shape index: {}]   ;;  %s1292_s2 = inlined_call_operand.vmem [shape: f32[3,8], index: 2, kind: input, shape index: {}]   ;;  %s1293_s3 = inlined_call_operand.vmem [shape: f32[100,8], index: 3, kind: input, shape index: {}]   ;;  %s1294_s4 = inlined_call_operand.vmem [shape: f32[28,32], index: 4, kind: input, shape index: {}]   ;;  %s1295_s5 = inlined_call_operand.vmem [shape: f32[1,32], index: 5, kind: input, shape index: {}]   ;;  %s1296_s6 = inlined_call_operand.vmem [shape: f32[32,16], index: 6, kind: input, shape index: {}]   ;;  %s1297_s7 = inlined_call_operand.vmem [shape: f32[1,16], index: 7, kind: input, shape index: {}]   ;;  %s1298_s8 = inlined_call_operand.hbm [shape: f32[8,16], index: 8, kind: output, shape index: {}]  }
   0x1   :  { %v1104_v0 = vld [vmem:[%s1290_s0] sm:$0xff]  ;;  %995 = vset.pattern.permute.xlu0 %v1041_v1  ;;  %997 = vset.pattern.permute.xlu1 %v1041_v1 }
   0x2   :  { %v978_v2 = vtrunc.f32 %v1104_v0 }
   0x3   :  { %13 = vsyncpa [#allocation3], 0  ;;  %v1042_v3 = vmov 0.0   ;;  %v1043_v6 = vmov 3   ;;  %v1044_v7 = vmov 4   ;;  %v1045_v8 = vmov 6  }
   0x4   :  { %918 = vmatprep.subr.mxu1 %v1042_v3  ;;  %896 = vmatprep.subr.mxu0 %v1042_v3  ;;  %v1109_v4 = vcvt.f32.s32 %v978_v2  ;;  %v1046_v9 = vmov 5   ;;  %v1047_v10 = vmov 0   ;;  %v329_v11 = vld [vmem:[%s1293_s3 + $0x60] sm:$0xf]  ;;  %vm334_vm1 = vcmask 1043456   ;;  %v328_v13 = vld [vmem:[%s1293_s3 + $0x58] sm:$0xff] }
   0x5   :  { %919 = vmatpush3.msk.msra.mxu1 %vm334_vm1, %v329_v11  ;;  %v46_v12 = vld [vmem:[%s1291_s1 + $0x30] sm:$0x3]  ;;  %vm51_vm2 = vcmask 1041408   ;;  %v1048_v14 = vmov 8   ;;  %v45_v15 = vld [vmem:[%s1291_s1 + $0x28] sm:$0xff]  ;;  %v44_v17 = vld [vmem:[%s1291_s1 + $0x20] sm:$0xff]  ;;  %v32_v41 = vlaneseq }
   0x6   :  { %222 = vperm.xlu0 %995, %v1109_v4   ;;  %vm210_vm0 = vcmp.ne.s32.totalorder %v1109_v4, 0  ;;  %897 = vmatpush3.msk.msra.mxu0 %vm51_vm2, %v46_v12  ;;  %v327_v16 = vld [vmem:[%s1293_s3 + $0x50] sm:$0xff]  ;;  %v1049_v18 = vmov 9   ;;  %v326_v19 = vld [vmem:[%s1293_s3 + $0x48] sm:$0xff]  ;;  %v1050_v20 = vmov 7   ;;  %v43_v21 = vld [vmem:[%s1291_s1 + $0x18] sm:$0xff] }
   0x7   :  { %v1114_v5 = vsel %vm210_vm0, 1.0, %v1042_v3  ;;  %920 = vmatprep.subr.mxu1 %v1042_v3  ;;  %898 = vmatprep.subr.mxu0 %v1042_v3  ;;  %v325_v22 = vld [vmem:[%s1293_s3 + $0x40] sm:$0xff]  ;;  %v42_v23 = vld [vmem:[%s1291_s1 + $0x10] sm:$0xff]  ;;  %v324_v24 = vld [vmem:[%s1293_s3 + $0x38] sm:$0xff]  ;;  %vm1051_vm3 = vmmov 0   ;;  %v1052_v33 = vmov 1  }
   0x8   :  { %228 = vperm.xlu1 %997, %v1114_v5   ;;  %921 = vmatpush3.msra.mxu1 %v328_v13  ;;  %v41_v25 = vld [vmem:[%s1291_s1 + $0x8] sm:$0xff]  ;;  %v323_v26 = vld [vmem:[%s1293_s3 + $0x30] sm:$0xff]  ;;  %v40_v27 = vld [vmem:[%s1291_s1] sm:$0xff]  ;;  %s1053_s22 = smov 118   ;;  %s1054_s23 = smov 126   ;;  %v33_v44 = vand.u32 127, %v32_v41 }
   0x9   :  { %899 = vmatpush3.msra.mxu0 %v45_v15  ;;  %922 = vmatprep.subr.mxu1 %v1042_v3  ;;  %v322_v28 = vld [vmem:[%s1293_s3 + $0x28] sm:$0xff]  ;;  %v321_v29 = vld [vmem:[%s1293_s3 + $0x20] sm:$0xff]  ;;  %v320_v30 = vld [vmem:[%s1293_s3 + $0x18] sm:$0xff]  ;;  %vm47_vm4 = vcmask 408576   ;;  %vm136_vm6 = vcmask 1042432   ;;  %vm330_vm15 = vcmask 818176  }
   0xa   :  { %996 = vset.pattern.permute.xlu0 %v1043_v6  ;;  %900 = vmatprep.subr.mxu0 %v1042_v3  ;;  %v319_v31 = vld [vmem:[%s1293_s3 + $0x10] sm:$0xff]  ;;  %v318_v32 = vld [vmem:[%s1293_s3 + $0x8] sm:$0xff]  ;;  %v317_v34 = vld [vmem:[%s1293_s3] sm:$0xff]  ;;  %vm132_vm0 = vcmask 23552  }
   0xb   :  { %234 = vperm.xlu0 %996, %v1109_v4   ;;  %923 = vmatpush3.msra.mxu1 %v327_v16  ;;  %v131_v47 = vld [vmem:[%s1292_s2] sm:$0x7] }
   0xc   :  { %998 = vset.pattern.permute.xlu1 %v1043_v6  ;;  %901 = vmatpush3.msra.mxu0 %v44_v17  ;;  %v852_v41 = vld [vmem:[%s1295_s5] ss:$0 sm:$0xff]  ;;  %s1055_s5 = smov [#allocation2]  }
   0xd   :  { %240 = vperm.xlu1 %998, %v1114_v5   ;;  %924 = vmatprep.subr.mxu1 %v1042_v3  ;;  %s826_s18 = sshll.u32 %s1055_s5, 4  ;;  %s827_s18 = int_to_ptr.vmem [resolvable:$true] %s826_s18 }
   0xe   :  { %902 = vmatprep.subr.mxu0 %v1042_v3  ;;  %925 = vmatpush3.msra.mxu1 %v326_v19  ;;  %s1019_s19 = scalar_lea.vmem %s827_s18, 128  ;;  %p1024_p1 = scmp.lt.s32.totalorder %s827_s18, %s827_s18 }
   0xf   :  { %1000 = vset.pattern.permute.xlu0 %v1044_v7  ;;  %903 = vmatpush3.msra.mxu0 %v43_v21  ;;  %v412_v21 = vld [vmem:[%s1294_s4 + $0x8] sm:$0xff]  ;;  %p1020_p0 = scmp.ne.s32.totalorder %s827_s18, %s1019_s19  ;;  %p1025_p2 = scmp.lt.s32.totalorder %s1019_s19, %s1019_s19 }
  0x10   :  { %252 = vperm.xlu0 %1000, %v1114_v5   ;;  %926 = vmatprep.subr.mxu1 %v1042_v3 }
  0x11   :  { %999 = vset.pattern.permute.xlu1 %v1044_v7  ;;  %904 = vmatprep.subr.mxu0 %v1042_v3  ;;  %p1026_p3 = por %p1025_p2, %p1024_p1 }
  0x12   :  { %246 = vperm.xlu1 %999, %v1109_v4   ;;  %927 = vmatpush3.msra.mxu1 %v325_v22 }
  0x13   :  { %905 = vmatpush3.msra.mxu0 %v42_v23  ;;  %928 = vmatprep.subr.mxu1 %v1042_v3  ;;  %p1027_p4 = pnand %p1026_p3, %p1020_p0 }
  0x14   :  { %1002 = vset.pattern.permute.xlu0 %v1045_v8  ;;  %906 = vmatprep.subr.mxu0 %v1042_v3 }
  0x15   :  { %270 = vperm.xlu0 %1002, %v1109_v4   ;;  %929 = vmatpush3.msra.mxu1 %v324_v24 }
  0x16   :  { %1001 = vset.pattern.permute.xlu1 %v1046_v9  ;;  %907 = vmatpush3.msra.mxu0 %v41_v25 }
  0x17   :  { %258 = vperm.xlu1 %1001, %v1109_v4   ;;  %930 = vmatprep.subr.mxu1 %v1042_v3 }
  0x18   :  { %908 = vmatprep.subr.mxu0 %v1042_v3  ;;  %931 = vmatpush3.msra.mxu1 %v323_v26 }
  0x19   :  { %1005 = vset.pattern.permute.xlu0 %v1047_v10  ;;  %909 = vmatpush3.msra.mxu0 %v40_v27  ;;  %v413_v27 = vld [vmem:[%s1294_s4 + $0x10] sm:$0xff] }
  0x1a   :  { %35 = vperm.xlu0 %1005, %v1109_v4   ;;  %910 = vmatprep.mubr.msk.f32.mxu0 %vm1051_vm3, %v1042_v3 }
  0x1b   :  { %264 = vperm.xlu1 %1001, %v1114_v5   ;;  %932 = vmatprep.subr.mxu1 %v1042_v3 }
  0x1c   :  { %933 = vmatpush3.msra.mxu1 %v322_v28  ;;  %913 = vmatprep.subr.mxu0 %v1042_v3 }
  0x1d   :  { %934 = vmatprep.subr.mxu1 %v1042_v3  ;;  %944 = vmatprep.mubr.msk.f32.mxu1 %vm1051_vm3, %v1042_v3 }
  0x1e   :  { %1007 = vset.pattern.permute.xlu0 %v1048_v14  ;;  %935 = vmatpush3.msra.mxu1 %v321_v29 }
  0x1f   :  { %1003 = vset.pattern.permute.xlu1 %v1045_v8  ;;  %300 = vperm.xlu0 %1007, %v1114_v5  }
  0x20   :  { %276 = vperm.xlu1 %1003, %v1114_v5   ;;  %936 = vmatprep.subr.mxu1 %v1042_v3 }
  0x21   :  { %937 = vmatpush3.msra.mxu1 %v320_v30 }
  0x22   :  { %938 = vmatprep.subr.mxu1 %v1042_v3 }
  0x23   :  { %1010 = vset.pattern.permute.xlu0 %v1049_v18  ;;  %939 = vmatpush3.msra.mxu1 %v319_v31 }
  0x24   :  { %1004 = vset.pattern.permute.xlu1 %v1050_v20  ;;  %312 = vperm.xlu0 %1010, %v1114_v5   ;;  %v411_v20 = vld [vmem:[%s1294_s4] sm:$0xff] }
  0x25   :  { %282 = vperm.xlu1 %1004, %v1109_v4   ;;  %940 = vmatprep.subr.mxu1 %v1042_v3 }
  0x26   :  { %941 = vmatpush3.msra.mxu1 %v318_v32 }
  0x27   :  { %942 = vmatprep.subr.mxu1 %v1042_v3 }
  0x28   :  { %943 = vmatpush3.msra.mxu1 %v317_v34  ;;  %645 = vrot.lane.b32.xlu0 %v1104_v0, %s1053_s22 }
  0x29   :  { %288 = vperm.xlu1 %1004, %v1114_v5   ;;  %967 = vmatprep.subr.mxu1 %v1042_v3 }
  0x2d   :  { %1006 = vset.pattern.permute.xlu1 %v1048_v14 }
  0x2e   :  { %294 = vperm.xlu1 %1006, %v1109_v4  }
  0x32   :  { %1008 = vset.pattern.permute.xlu1 %v1049_v18 }
  0x33   :  { %306 = vperm.xlu1 %1008, %v1109_v4  }
  0x37   :  { %1009 = vset.pattern.permute.xlu1 %v1052_v33  ;;  %v414_v33 = vld [vmem:[%s1294_s4 + $0x18] sm:$0xf] }
  0x38   :  { %126 = vperm.xlu1 %1009, %v1109_v4  }
  0x3c   :  { %214 = vrot.lane.b32.xlu1 %v1114_v5, %s1054_s23 }
  0x81   :  { %v223_v35 = vpop.permute.xlu0 %222 }
  0x82   :  { %vm224_vm8 = vcmp.eq.s32.totalorder %v33_v44, %v223_v35  ;;  %v728_v35 = vld [vmem:[%s1296_s6 + $0x18] sm:$0xff] }
  0x83   :  { %v229_v36 = vpop.permute.xlu1 %228  ;;  %v841_v52 = vsel %vm224_vm8, 1.0, %v1042_v3 }
  0x84   :  { %v231_v56 = vmul.f32 %v841_v52, %v229_v36  ;;  %v727_v36 = vld [vmem:[%s1296_s6 + $0x10] sm:$0xff]  ;;  %v857_v52 = vld [vmem:[%s1297_s7] ss:$0 sm:$0xff] }
  0x86   :  { %v235_v38 = vpop.permute.xlu0 %234 }
  0x87   :  { %vm236_vm7 = vcmp.eq.s32.totalorder %v33_v44, %v235_v38  ;;  %v725_v38 = vld [vmem:[%s1296_s6] sm:$0xff] }
  0x88   :  { %v241_v37 = vpop.permute.xlu1 %240  ;;  %v842_v50 = vsel %vm236_vm7, 1.0, %v1042_v3 }
  0x89   :  { %v243_v54 = vmul.f32 %v842_v50, %v241_v37  ;;  %v726_v37 = vld [vmem:[%s1296_s6 + $0x8] sm:$0xff] }
  0x8b   :  { %v253_v40 = vpop.permute.xlu0 %252  ;;  %v244_v60 = vadd.f32 %v243_v54, %v231_v56 }
  0x8d   :  { %v247_v39 = vpop.permute.xlu1 %246 }
  0x8e   :  { %vm248_vm9 = vcmp.eq.s32.totalorder %v33_v44, %v247_v39 }
  0x8f   :  { %v843_v53 = vsel %vm248_vm9, 1.0, %v1042_v3 }
  0x90   :  { %v271_v42 = vpop.permute.xlu0 %270  ;;  %v255_v57 = vmul.f32 %v843_v53, %v253_v40 }
  0x91   :  { %vm272_vm11 = vcmp.eq.s32.totalorder %v33_v44, %v271_v42 }
  0x92   :  { %v259_v43 = vpop.permute.xlu1 %258  ;;  %v845_v59 = vsel %vm272_vm11, 1.0, %v1042_v3  ;;  %v256_v63 = vadd.f32 %v255_v57, %v244_v60 }
  0x93   :  { %vm260_vm10 = vcmp.eq.s32.totalorder %v33_v44, %v259_v43 }
  0x94   :  { %v844_v58 = vsel %vm260_vm10, 1.0, %v1042_v3 }
  0x95   :  { %v36_v45 = vpop.permute.xlu0 %35 }
  0x96   :  { %v265_v46 = vpop.permute.xlu1 %264  ;;  %vm37_vm5 = vcmp.eq.s32.totalorder %v33_v44, %v36_v45 }
  0x97   :  { %v834_v48 = vsel %vm37_vm5, 1.0, %v1042_v3  ;;  %v267_v61 = vmul.f32 %v844_v58, %v265_v46  ;;  %vm647_vm5 = vcmask 31744  }
  0x98   :  { %911 = vmatmul.mubr.msk.f32.vlgmr.msra.gmra.mxu0 %vm47_vm4, %v834_v48  ;;  %vm217_vm4 = vcmask 64512  }
  0x99   :  { %914 = vmatpush3.msk.msra.mxu0 %vm136_vm6, %v131_v47  ;;  %915 = vmatprep.mubr.msk.f32.mxu0 %vm1051_vm3, %v1042_v3  ;;  %v268_v4 = vadd.f32 %v267_v61, %v256_v63 }
  0x9a   :  { %947 = vmatprep.subr.mxu0 %v1042_v3  ;;  %v301_v62 = vpop.permute.xlu0 %300 }
  0x9b   :  { %v277_v49 = vpop.permute.xlu1 %276 }
  0x9c   :  { %v279_v0 = vmul.f32 %v845_v59, %v277_v49 }
  0x9e   :  { %v280_v7 = vadd.f32 %v279_v0, %v268_v4 }
  0x9f   :  { %v313_v10 = vpop.permute.xlu0 %312 }
  0xa0   :  { %v283_v51 = vpop.permute.xlu1 %282 }
  0xa1   :  { %vm284_vm12 = vcmp.eq.s32.totalorder %v33_v44, %v283_v51 }
  0xa2   :  { %v846_v2 = vsel %vm284_vm12, 1.0, %v1042_v3 }
  0xa3   :  { %v646_v34 = vpop.permute.xlu0 %645 }
  0xa4   :  { %v289_v55 = vpop.permute.xlu1 %288 }
  0xa5   :  { %v291_v5 = vmul.f32 %v846_v2, %v289_v55 }
  0xa7   :  { %v292_v11 = vadd.f32 %v291_v5, %v280_v7 }
  0xa9   :  { %v295_v1 = vpop.permute.xlu1 %294 }
  0xaa   :  { %vm296_vm13 = vcmp.eq.s32.totalorder %v33_v44, %v295_v1 }
  0xab   :  { %v847_v6 = vsel %vm296_vm13, 1.0, %v1042_v3 }
  0xac   :  { %v303_v8 = vmul.f32 %v847_v6, %v301_v62 }
  0xae   :  { %v307_v9 = vpop.permute.xlu1 %306  ;;  %v304_v13 = vadd.f32 %v303_v8, %v292_v11 }
  0xaf   :  { %vm308_vm14 = vcmp.eq.s32.totalorder %v33_v44, %v307_v9 }
  0xb0   :  { %v848_v12 = vsel %vm308_vm14, 1.0, %v1042_v3 }
  0xb1   :  { %v315_v14 = vmul.f32 %v848_v12, %v313_v10 }
  0xb3   :  { %v316_v15 = vadd.f32 %v315_v14, %v304_v13  ;;  %v127_v16 = vpop.permute.xlu1 %126 }
  0xb4   :  { %vm128_vm2 = vcmp.eq.s32.totalorder %v33_v44, %v127_v16 }
  0xb5   :  { %v837_v17 = vsel %vm128_vm2, 1.0, %v1042_v3  ;;  %945 = vmatmul.mubr.msk.f32.vlgmr.msra.gmra.mxu1 %vm330_vm15, %v316_v15 }
  0xb6   :  { %916 = vmatmul.mubr.msk.f32.vlgmr.msra.gmra.mxu0 %vm132_vm0, %v837_v17  ;;  %975 = vmatprep.mubr.msk.f32.mxu1 %vm1051_vm3, %v1042_v3 }
  0xb7   :  { %v215_v18 = vpop.permute.xlu1 %214  ;;  %949 = vmatprep.mubr.msk.f32.mxu0 %vm1051_vm3, %v1042_v3  ;;  %948 = vmatpush3.msra.mxu0 %v411_v20 }
  0xb8   :  { %v218_v19 = vsel %vm217_vm4, %v215_v18, 0.0  ;;  %952 = vmatprep.subr.mxu0 %v1042_v3  ;;  %968 = vmatpush3.msra.mxu1 %v728_v35 }
  0xb9   :  { %219 = vadd.xlane.f32.xlu1 %v218_v19  ;;  %969 = vmatprep.subr.mxu1 %v1042_v3 }
  0xba   :  { %970 = vmatpush3.msra.mxu1 %v727_v36 }
  0xbb   :  { %971 = vmatprep.subr.mxu1 %v1042_v3 }
  0xbc   :  { %972 = vmatpush3.msra.mxu1 %v726_v37 }
  0xbd   :  { %973 = vmatprep.subr.mxu1 %v1042_v3 }
  0xbe   :  { %974 = vmatpush3.msra.mxu1 %v725_v38 }
 0x142   :  { %v220_v24 = vpop.xlane.xlu1 %219 }
 0x143   :  { %v408_v25 = vadd.f32 1e-08, %v220_v24 }
 0x145   :  { %1011 = vrcp.f32 %v408_v25 }
 0x152   :  { %v1012_v28 = vpop.eup %1011 }
 0x158   :  { %v121_v22 = vpop.f32.mrf.mxu0 }
 0x159   :  { %950 = vmatmul.mubr.msk.f32.vlgmr.msra.gmra.mxu0 %vm217_vm4, %v121_v22 }
 0x15a   :  { %v912_v23 = vpop.f32.mrf.mxu0  ;;  %953 = vmatpush3.msra.mxu0 %v412_v21  ;;  %954 = vmatprep.mubr.msk.f32.mxu0 %vm1051_vm3, %v1042_v3 }
 0x15b   :  { %957 = vmatprep.subr.mxu0 %v1042_v3 }
 0x175   :  { %v404_v26 = vpop.f32.mrf.mxu1 }
 0x176   :  { %v206_v29 = vpop.f32.mrf.mxu0  ;;  %v410_v32 = vmul.f32 %v1012_v28, %v404_v26 }
 0x177   :  { %v946_v30 = vpop.f32.mrf.mxu1  ;;  %955 = vmatmul.mubr.msk.f32.vlgmr.msra.gmra.mxu0 %vm217_vm4, %v206_v29 }
 0x178   :  { %958 = vmatpush3.msra.mxu0 %v413_v27  ;;  %v917_v31 = vpop.f32.mrf.mxu0  ;;  %959 = vmatprep.mubr.msk.f32.mxu0 %vm1051_vm3, %v1042_v3 }
 0x179   :  { %962 = vmatprep.subr.mxu0 %v1042_v3 }
 0x17b   :  { %960 = vmatmul.mubr.msk.f32.vlgmr.msra.gmra.mxu0 %vm217_vm4, %v410_v32 }
 0x17c   :  { %963 = vmatpush3.msk.msra.mxu0 %vm334_vm1, %v414_v33  ;;  %964 = vmatprep.mubr.msk.f32.mxu0 %vm1051_vm3, %v1042_v3  ;;  %vm736_vm1 = vcmask 261120   ;;  %vm812_vm3 = vcmask 130048  }
 0x17f   :  { %965 = vmatmul.mubr.msk.f32.vlgmr.msra.gmra.mxu0 %vm647_vm5, %v646_v34 }
 0x219   :  { %v485_v39 = vpop.f32.mrf.mxu0 }
 0x21a   :  { %v495_v44 = vadd.f32 %v852_v41, %v485_v39 }
 0x21b   :  { %v951_v40 = vpop.f32.mrf.mxu0 }
 0x237   :  { %v565_v42 = vpop.f32.mrf.mxu0 }
 0x238   :  { %v569_v46 = vadd.f32 %v565_v42, %v495_v44 }
 0x239   :  { %v956_v43 = vpop.f32.mrf.mxu0 }
 0x23b   :  { %v639_v45 = vpop.f32.mrf.mxu0 }
 0x23c   :  { %v643_v48 = vadd.f32 %v639_v45, %v569_v46 }
 0x23d   :  { %v961_v47 = vpop.f32.mrf.mxu0 }
 0x23f   :  { %v719_v49 = vpop.f32.mrf.mxu0 }
 0x240   :  { %v723_v50 = vadd.f32 %v719_v49, %v643_v48 }
 0x241   :  { %v966_v51 = vpop.f32.mrf.mxu0 }
 0x242   :  { %1013 = vtanh.f32 %v723_v50 }
 0x24f   :  { %v1014_v3 = vpop.eup %1013 }
 0x250   :  { %976 = vmatmul.mubr.msk.f32.vlgmr.msra.gmra.mxu1 %vm736_vm1, %v1014_v3 }
 0x310   :  { %v806_v53 = vpop.f32.mrf.mxu1 }
 0x311   :  { %v807_v54 = vadd.f32 %v857_v52, %v806_v53 }
 0x312   :  { %v977_v55 = vpop.f32.mrf.mxu1 }
 0x313   :  { %1015 = vtanh.f32 %v807_v54 }
 0x320   :  { %v1016_v56 = vpop.eup %1015 }
 0x321   :  { %v811_v57 = vmul.f32 %v1016_v56, %v1016_v56 }
 0x323   :  { %v813_v58 = vsel %vm812_vm3, %v811_v57, 0.0 }
 0x324   :  { %814 = vadd.xlane.f32.xlu0 %v813_v58 }
 0x3ad   :  { %v815_v59 = vpop.xlane.xlu0 %814 }
 0x3ae   :  { %v816_v60 = vmax.f32 %v815_v59, 1e-24 }
 0x3b0   :  { %1017 = vrsqrt.f32 %v816_v60 }
 0x3bd   :  { %v1018_v61 = vpop.eup %1017 }
 0x3be   :  { %v818_v62 = vmul.f32 %v1018_v61, %v1016_v56 }
 0x3c0   :  { %819 = vst.msk [vmem:[#allocation2] sm:$0xff] %vm812_vm3, %v818_v62 }
 0x3c1   :  { %1030 = shalt.err (!%p1027_p4)
}
 0x3c2   :  { %829 = dma.vmem_to_hbm [thread:$0]  %s827_s18, 128, %s1298_s8, [#allocation3]  }
 0x3c3   :  { %1039 = dma.done.wait [#allocation3], 128  }
 0x3c4   :  { %1040 = vsyncadd [#allocation3], 4294967168 }
 0x3c5   :  { %833 = vsyncpa [#allocation3], 1 }

</bundles_post_ra>
